<compile_context>
chip_gen: v6e
topology: v6e:2x2x1
jax: 0.10.0
libtpu: 0.0.40
codegen_flags: <defaults>
</compile_context>

<pallas_src>
import jax
import jax.numpy as jnp
from jax import lax
from jax.experimental import pallas as pl
from jax.experimental.pallas import tpu as pltpu


def token_model_kernel(x_ref, wih_ref, whh_ref, b_ref, wout_ref, bout_ref, out_ref):
    """Fused bidirectional LSTM (batch=1) + linear head.

    Gate layout along the 8H axis (gate-grouped, fwd/bwd interleaved):
        [ i_f | i_b | f_f | f_b | g_f | g_b | o_f | o_b ]   (each block H wide)
    so the (1, 2H) state [h_f | h_b] aligns with every gate slice directly.
    x_ref row t is [x_t | x_{T-1-t}] and wih_ref routes fwd/bwd columns from the
    matching half, so xg row t already holds both directions' gate inputs.
    """
    T = x_ref.shape[0]
    H2 = whh_ref.shape[0]          # 2 * hidden
    H = H2 // 2
    H4 = 4 * H

    whh = whh_ref[...]             # (2H, 8H) bf16 block-diagonal recurrent weights

    # Hoisted, time-parallel input projection (+ fused bias) for both directions:
    # one bf16 MXU matmul with f32 accumulation.
    xg = (jnp.dot(x_ref[...].astype(jnp.bfloat16), wih_ref[...],
                  preferred_element_type=jnp.float32)
          + b_ref[...])            # (T, 8H) f32

    # ---- peeled t = 0: h = c = 0 -> no recurrent matmul, no f*c term ----
    g = xg[0:1, :]
    s = jax.nn.sigmoid(g)                                # i/f/o gates (f unused)
    c = s[:, 0:H2] * jnp.tanh(g[:, H4:H4 + H2])          # c = i * g_cand
    h = s[:, 3 * H2:] * jnp.tanh(c)                      # h = o * tanh(c)

    # ---- remaining fully-unrolled steps (T is static and tiny) ----
    # TODO(synk): whh could be held in the MXU weight registers across the loop
    # (pltpu.matmul_push_rhs / matmul_acc_lhs / matmul_pop) to avoid re-streaming
    # the RHS every step; kept on jnp.dot for portable lowering.
    for t in range(1, T):
        g = xg[t:t + 1, :] + jnp.dot(h.astype(jnp.bfloat16), whh,
                                     preferred_element_type=jnp.float32)  # (1, 8H)
        s = jax.nn.sigmoid(g)                            # one full-width sigmoid
        c = s[:, H2:2 * H2] * c + s[:, 0:H2] * jnp.tanh(g[:, H4:H4 + H2])
        h = s[:, 3 * H2:] * jnp.tanh(c)

    # reshape(h_n, (1, 2H)) == [h_fwd_final | h_bwd_final] == h (already fused).
    # TODO(synk): nn.Dropout(p=0.5) is stochastic in training; identity here (eval).
    out_ref[...] = (jnp.dot(h, wout_ref[...], preferred_element_type=jnp.float32)
                    + bout_ref[...])                     # lane-dense (1, P>=128)


def prepare_token_model_params(params, input_size, hidden_size):
    """One-time fusion/packing of PyTorch-layout LSTM + Linear parameters.

    Done once at setup so token_model_forward does no per-call transposes/adds,
    and so the per-step direction select is folded into the weight layout.
    """
    D, H = input_size, hidden_size
    f32 = jnp.float32

    wih_f_t = params["w_ih_f"].T.astype(f32)   # (D, 4H) columns in [i, f, g, o] order
    wih_b_t = params["w_ih_b"].T.astype(f32)
    whh_f_t = params["w_hh_f"].T.astype(f32)   # (H, 4H)
    whh_b_t = params["w_hh_b"].T.astype(f32)
    b_f = (params["b_ih_f"] + params["b_hh_f"]).astype(f32)   # (4H,)
    b_b = (params["b_ih_b"] + params["b_hh_b"]).astype(f32)

    def blk(w, g):      # gate column block g of a transposed weight
        return w[:, g * H:(g + 1) * H]

    # Fused input projection: (2D, 8H), columns [i_f,i_b,f_f,f_b,g_f,g_b,o_f,o_b].
    # Rows 0:D feed the fwd gate columns (from x_t), rows D:2D feed the bwd gate
    # columns (from x_{T-1-t}); zeros route the other direction's columns.
    zDH = jnp.zeros((D, H), f32)
    wih = jnp.concatenate(
        [jnp.concatenate(
            [jnp.concatenate([blk(wih_f_t, g), zDH], axis=1),
             jnp.concatenate([zDH, blk(wih_b_t, g)], axis=1)], axis=0)
         for g in range(4)],
        axis=1)

    # Block-diagonal recurrent weights: (2H, 8H); rows 0:H act on h_f, H:2H on h_b.
    zHH = jnp.zeros((H, H), f32)
    whh = jnp.concatenate(
        [jnp.concatenate(
            [jnp.concatenate([blk(whh_f_t, g), zHH], axis=1),
             jnp.concatenate([zHH, blk(whh_b_t, g)], axis=1)], axis=0)
         for g in range(4)],
        axis=1)

    # Fused bias: (1, 8H) in the same gate-grouped order (added post-matmul, f32).
    bias = jnp.concatenate(
        [jnp.concatenate([b_f[g * H:(g + 1) * H], b_b[g * H:(g + 1) * H]])
         for g in range(4)])[None, :]

    # Pad the output head to a lane-dense (>=128) width; wrapper slices back to D.
    # Kept in f32: it runs once, off the serial chain, and f32 keeps numerics tight.
    P = max(128, ((D + 127) // 128) * 128)
    wout = jnp.zeros((2 * H, P), f32).at[:, :D].set(params["w_h2o"].T.astype(f32))
    bout = jnp.zeros((1, P), f32).at[:, :D].set(params["b_h2o"].astype(f32)[None, :])

    return {"wih": wih.astype(jnp.bfloat16),   # MXU operands in bf16
            "whh": whh.astype(jnp.bfloat16),
            "bias": bias, "wout": wout, "bout": bout,
            "D": D, "H": H, "P": P}


def token_model_forward(inp, prepared):
    """inp: (T, 1, D) float32 (PyTorch nn.LSTM seq-major layout, batch must be 1)."""
    T, B, D = inp.shape
    assert B == 1, "Token_Model.forward implies batch size 1 (reshape to (1, 2H))"
    assert D == prepared["D"]
    x = inp[:, 0, :].astype(jnp.float32)

    # Fold the bidirectional time-reversal into the input: column block 0:D feeds
    # the forward gates with x_t, block D:2D feeds the backward gates with
    # x_{T-1-t}.  The tiny (T, D) flip+concat runs in plain XLA, off the kernel.
    x2 = jnp.concatenate([x, x[::-1, :]], axis=1)        # (T, 2D)

    # TODO(synk): if many sequences are processed, batch them into one call
    # (B-padded-to-8 recurrent LHS, grid over batch with
    # dimension_semantics=("parallel",) to use both v7x TensorCores); at B=1 the
    # per-call dispatch dominates and grids only add overhead.
    args = (x2, prepared["wih"], prepared["whh"], prepared["bias"],
            prepared["wout"], prepared["bout"])
    vmem = pl.BlockSpec(memory_space=pltpu.MemorySpace.VMEM)
    out = pl.pallas_call(
        token_model_kernel,
        out_shape=jax.ShapeDtypeStruct((1, prepared["P"]), jnp.float32),
        in_specs=[vmem] * len(args),
        out_specs=vmem,
    )(*args)
    return out[:, :D]


def init_params(key, input_size, hidden_size):
    """Deterministic init matching PyTorch LSTM/Linear parameter shapes."""
    H, D = hidden_size, input_size
    k = 1.0 / jnp.sqrt(jnp.float32(H))
    keys = jax.random.split(key, 10)
    u = lambda kk, shape: jax.random.uniform(kk, shape, jnp.float32, -k, k)
    return {
        "w_ih_f": u(keys[0], (4 * H, D)),
        "w_hh_f": u(keys[1], (4 * H, H)),
        "b_ih_f": u(keys[2], (4 * H,)),
        "b_hh_f": u(keys[3], (4 * H,)),
        "w_ih_b": u(keys[4], (4 * H, D)),
        "w_hh_b": u(keys[5], (4 * H, H)),
        "b_ih_b": u(keys[6], (4 * H,)),
        "b_hh_b": u(keys[7], (4 * H,)),
        "w_h2o": u(keys[8], (D, 2 * H)),
        "b_h2o": u(keys[9], (D,)),
    }


def token_model_reference(inp, params, hidden_size):
    """Pure-JAX replica of the PyTorch forward (eval mode) for validation."""
    H = hidden_size
    x = inp[:, 0, :].astype(jnp.float32)

    def run(xs, w_ih, w_hh, b_ih, b_hh):
        def cell(carry, x_t):
            h, c = carry
            g = x_t @ w_ih.T + h @ w_hh.T + b_ih + b_hh
            i = jax.nn.sigmoid(g[0:H])
            f = jax.nn.sigmoid(g[H:2 * H])
            gg = jnp.tanh(g[2 * H:3 * H])
            o = jax.nn.sigmoid(g[3 * H:4 * H])
            c = f * c + i * gg
            h = o * jnp.tanh(c)
            return (h, c), None
        (h, _), _ = lax.scan(cell, (jnp.zeros(H), jnp.zeros(H)), xs)
        return h

    h_f = run(x, params["w_ih_f"], params["w_hh_f"], params["b_ih_f"], params["b_hh_f"])
    h_b = run(x[::-1], params["w_ih_b"], params["w_hh_b"], params["b_ih_b"], params["b_hh_b"])
    hidden = jnp.concatenate([h_f, h_b])[None, :]
    return hidden @ params["w_h2o"].T + params["b_h2o"][None, :]


if __name__ == "__main__":
    input_size = 16   # D
    hidden_size = 32  # H  (8H = 256 -> gate preactivations span 2 lane-dense vregs)
    seq_len = 8       # T

    key = jax.random.PRNGKey(0)
    k_inp, k_par = jax.random.split(key)
    inp = jax.random.normal(k_inp, (seq_len, 1, input_size), jnp.float32)
    params = init_params(k_par, input_size, hidden_size)

    prepared = prepare_token_model_params(params, input_size, hidden_size)
    out = jax.block_until_ready(token_model_forward(inp, prepared))
    assert out.shape == (1, input_size)

    ref = jax.block_until_ready(token_model_reference(inp, params, hidden_size))
    assert jnp.allclose(out, ref, atol=2e-2, rtol=2e-2), (out, ref)
    print("KERNEL_OK")
</pallas_src>

<mosaic_0001>
module attributes {stable_mosaic.version = 11 : i64} {
  func.func @token_model_kernel(%arg0: memref<8x32xf32, #tpu.memory_space<vmem>>, %arg1: memref<32x256xbf16, #tpu.memory_space<vmem>>, %arg2: memref<64x256xbf16, #tpu.memory_space<vmem>>, %arg3: memref<1x256xf32, #tpu.memory_space<vmem>>, %arg4: memref<64x128xf32, #tpu.memory_space<vmem>>, %arg5: memref<1x128xf32, #tpu.memory_space<vmem>>, %arg6: memref<1x128xf32, #tpu.memory_space<vmem>>) attributes {dimension_semantics = [], scalar_prefetch = 0 : i64, scratch_operands = 0 : i64, tpu.core_type = #tpu.core_type<tc>} {
    %c0 = arith.constant 0 : index
    %c0_0 = arith.constant 0 : index
    %0 = vector.load %arg2[%c0, %c0_0] : memref<64x256xbf16, #tpu.memory_space<vmem>>, vector<64x256xbf16>
    %c0_1 = arith.constant 0 : index
    %c0_2 = arith.constant 0 : index
    %1 = vector.load %arg0[%c0_1, %c0_2] : memref<8x32xf32, #tpu.memory_space<vmem>>, vector<8x32xf32>
    %2 = arith.truncf %1 : vector<8x32xf32> to vector<8x32xbf16>
    %c0_3 = arith.constant 0 : index
    %c0_4 = arith.constant 0 : index
    %3 = vector.load %arg1[%c0_3, %c0_4] : memref<32x256xbf16, #tpu.memory_space<vmem>>, vector<32x256xbf16>
    %cst = arith.constant dense<0.000000e+00> : vector<8x256xf32>
    %4 = tpu.matmul %2, %3, %cst {dimension_numbers = #tpu.dot_dimension_numbers<[1], [0], [0], [1], [0, 0, 1, 1], [], []>} : vector<8x32xbf16>, vector<32x256xbf16>, vector<8x256xf32> -> vector<8x256xf32>
    %c0_5 = arith.constant 0 : index
    %c0_6 = arith.constant 0 : index
    %5 = vector.load %arg3[%c0_5, %c0_6] : memref<1x256xf32, #tpu.memory_space<vmem>>, vector<1x256xf32>
    %6 = vector.broadcast %5 : vector<1x256xf32> to vector<8x256xf32>
    %7 = arith.addf %4, %6 : vector<8x256xf32>
    %8 = vector.extract_strided_slice %7 {offsets = [0, 0], sizes = [1, 256], strides = [1, 1]} : vector<8x256xf32> to vector<1x256xf32>
    %9 = arith.negf %8 : vector<1x256xf32>
    %10 = math.exp %9 : vector<1x256xf32>
    %cst_7 = arith.constant 1.000000e+00 : f32
    %11 = vector.broadcast %cst_7 : f32 to vector<1x256xf32>
    %12 = arith.addf %11, %10 : vector<1x256xf32>
    %13 = arith.divf %11, %12 : vector<1x256xf32>
    %14 = vector.extract_strided_slice %13 {offsets = [0, 0], sizes = [1, 64], strides = [1, 1]} : vector<1x256xf32> to vector<1x64xf32>
    %15 = vector.extract_strided_slice %8 {offsets = [0, 128], sizes = [1, 64], strides = [1, 1]} : vector<1x256xf32> to vector<1x64xf32>
    %16 = math.tanh %15 : vector<1x64xf32>
    %17 = arith.mulf %14, %16 : vector<1x64xf32>
    %18 = vector.extract_strided_slice %13 {offsets = [0, 192], sizes = [1, 64], strides = [1, 1]} : vector<1x256xf32> to vector<1x64xf32>
    %19 = math.tanh %17 : vector<1x64xf32>
    %20 = arith.mulf %18, %19 : vector<1x64xf32>
    %21 = vector.extract_strided_slice %7 {offsets = [1, 0], sizes = [1, 256], strides = [1, 1]} : vector<8x256xf32> to vector<1x256xf32>
    %22 = arith.truncf %20 : vector<1x64xf32> to vector<1x64xbf16>
    %cst_8 = arith.constant dense<0.000000e+00> : vector<1x256xf32>
    %23 = tpu.matmul %22, %0, %cst_8 {dimension_numbers = #tpu.dot_dimension_numbers<[1], [0], [0], [1], [0, 0, 1, 1], [], []>} : vector<1x64xbf16>, vector<64x256xbf16>, vector<1x256xf32> -> vector<1x256xf32>
    %24 = arith.addf %21, %23 : vector<1x256xf32>
    %25 = arith.negf %24 : vector<1x256xf32>
    %26 = math.exp %25 : vector<1x256xf32>
    %cst_9 = arith.constant 1.000000e+00 : f32
    %27 = vector.broadcast %cst_9 : f32 to vector<1x256xf32>
    %28 = arith.addf %27, %26 : vector<1x256xf32>
    %29 = arith.divf %27, %28 : vector<1x256xf32>
    %30 = vector.extract_strided_slice %29 {offsets = [0, 64], sizes = [1, 64], strides = [1, 1]} : vector<1x256xf32> to vector<1x64xf32>
    %31 = arith.mulf %30, %17 : vector<1x64xf32>
    %32 = vector.extract_strided_slice %29 {offsets = [0, 0], sizes = [1, 64], strides = [1, 1]} : vector<1x256xf32> to vector<1x64xf32>
    %33 = vector.extract_strided_slice %24 {offsets = [0, 128], sizes = [1, 64], strides = [1, 1]} : vector<1x256xf32> to vector<1x64xf32>
    %34 = math.tanh %33 : vector<1x64xf32>
    %35 = arith.mulf %32, %34 : vector<1x64xf32>
    %36 = arith.addf %31, %35 : vector<1x64xf32>
    %37 = vector.extract_strided_slice %29 {offsets = [0, 192], sizes = [1, 64], strides = [1, 1]} : vector<1x256xf32> to vector<1x64xf32>
    %38 = math.tanh %36 : vector<1x64xf32>
    %39 = arith.mulf %37, %38 : vector<1x64xf32>
    %40 = vector.extract_strided_slice %7 {offsets = [2, 0], sizes = [1, 256], strides = [1, 1]} : vector<8x256xf32> to vector<1x256xf32>
    %41 = arith.truncf %39 : vector<1x64xf32> to vector<1x64xbf16>
    %cst_10 = arith.constant dense<0.000000e+00> : vector<1x256xf32>
    %42 = tpu.matmul %41, %0, %cst_10 {dimension_numbers = #tpu.dot_dimension_numbers<[1], [0], [0], [1], [0, 0, 1, 1], [], []>} : vector<1x64xbf16>, vector<64x256xbf16>, vector<1x256xf32> -> vector<1x256xf32>
    %43 = arith.addf %40, %42 : vector<1x256xf32>
    %44 = arith.negf %43 : vector<1x256xf32>
    %45 = math.exp %44 : vector<1x256xf32>
    %cst_11 = arith.constant 1.000000e+00 : f32
    %46 = vector.broadcast %cst_11 : f32 to vector<1x256xf32>
    %47 = arith.addf %46, %45 : vector<1x256xf32>
    %48 = arith.divf %46, %47 : vector<1x256xf32>
    %49 = vector.extract_strided_slice %48 {offsets = [0, 64], sizes = [1, 64], strides = [1, 1]} : vector<1x256xf32> to vector<1x64xf32>
    %50 = arith.mulf %49, %36 : vector<1x64xf32>
    %51 = vector.extract_strided_slice %48 {offsets = [0, 0], sizes = [1, 64], strides = [1, 1]} : vector<1x256xf32> to vector<1x64xf32>
    %52 = vector.extract_strided_slice %43 {offsets = [0, 128], sizes = [1, 64], strides = [1, 1]} : vector<1x256xf32> to vector<1x64xf32>
    %53 = math.tanh %52 : vector<1x64xf32>
    %54 = arith.mulf %51, %53 : vector<1x64xf32>
    %55 = arith.addf %50, %54 : vector<1x64xf32>
    %56 = vector.extract_strided_slice %48 {offsets = [0, 192], sizes = [1, 64], strides = [1, 1]} : vector<1x256xf32> to vector<1x64xf32>
    %57 = math.tanh %55 : vector<1x64xf32>
    %58 = arith.mulf %56, %57 : vector<1x64xf32>
    %59 = vector.extract_strided_slice %7 {offsets = [3, 0], sizes = [1, 256], strides = [1, 1]} : vector<8x256xf32> to vector<1x256xf32>
    %60 = arith.truncf %58 : vector<1x64xf32> to vector<1x64xbf16>
    %cst_12 = arith.constant dense<0.000000e+00> : vector<1x256xf32>
    %61 = tpu.matmul %60, %0, %cst_12 {dimension_numbers = #tpu.dot_dimension_numbers<[1], [0], [0], [1], [0, 0, 1, 1], [], []>} : vector<1x64xbf16>, vector<64x256xbf16>, vector<1x256xf32> -> vector<1x256xf32>
    %62 = arith.addf %59, %61 : vector<1x256xf32>
    %63 = arith.negf %62 : vector<1x256xf32>
    %64 = math.exp %63 : vector<1x256xf32>
    %cst_13 = arith.constant 1.000000e+00 : f32
    %65 = vector.broadcast %cst_13 : f32 to vector<1x256xf32>
    %66 = arith.addf %65, %64 : vector<1x256xf32>
    %67 = arith.divf %65, %66 : vector<1x256xf32>
    %68 = vector.extract_strided_slice %67 {offsets = [0, 64], sizes = [1, 64], strides = [1, 1]} : vector<1x256xf32> to vector<1x64xf32>
    %69 = arith.mulf %68, %55 : vector<1x64xf32>
    %70 = vector.extract_strided_slice %67 {offsets = [0, 0], sizes = [1, 64], strides = [1, 1]} : vector<1x256xf32> to vector<1x64xf32>
    %71 = vector.extract_strided_slice %62 {offsets = [0, 128], sizes = [1, 64], strides = [1, 1]} : vector<1x256xf32> to vector<1x64xf32>
    %72 = math.tanh %71 : vector<1x64xf32>
    %73 = arith.mulf %70, %72 : vector<1x64xf32>
    %74 = arith.addf %69, %73 : vector<1x64xf32>
    %75 = vector.extract_strided_slice %67 {offsets = [0, 192], sizes = [1, 64], strides = [1, 1]} : vector<1x256xf32> to vector<1x64xf32>
    %76 = math.tanh %74 : vector<1x64xf32>
    %77 = arith.mulf %75, %76 : vector<1x64xf32>
    %78 = vector.extract_strided_slice %7 {offsets = [4, 0], sizes = [1, 256], strides = [1, 1]} : vector<8x256xf32> to vector<1x256xf32>
    %79 = arith.truncf %77 : vector<1x64xf32> to vector<1x64xbf16>
    %cst_14 = arith.constant dense<0.000000e+00> : vector<1x256xf32>
    %80 = tpu.matmul %79, %0, %cst_14 {dimension_numbers = #tpu.dot_dimension_numbers<[1], [0], [0], [1], [0, 0, 1, 1], [], []>} : vector<1x64xbf16>, vector<64x256xbf16>, vector<1x256xf32> -> vector<1x256xf32>
    %81 = arith.addf %78, %80 : vector<1x256xf32>
    %82 = arith.negf %81 : vector<1x256xf32>
    %83 = math.exp %82 : vector<1x256xf32>
    %cst_15 = arith.constant 1.000000e+00 : f32
    %84 = vector.broadcast %cst_15 : f32 to vector<1x256xf32>
    %85 = arith.addf %84, %83 : vector<1x256xf32>
    %86 = arith.divf %84, %85 : vector<1x256xf32>
    %87 = vector.extract_strided_slice %86 {offsets = [0, 64], sizes = [1, 64], strides = [1, 1]} : vector<1x256xf32> to vector<1x64xf32>
    %88 = arith.mulf %87, %74 : vector<1x64xf32>
    %89 = vector.extract_strided_slice %86 {offsets = [0, 0], sizes = [1, 64], strides = [1, 1]} : vector<1x256xf32> to vector<1x64xf32>
    %90 = vector.extract_strided_slice %81 {offsets = [0, 128], sizes = [1, 64], strides = [1, 1]} : vector<1x256xf32> to vector<1x64xf32>
    %91 = math.tanh %90 : vector<1x64xf32>
    %92 = arith.mulf %89, %91 : vector<1x64xf32>
    %93 = arith.addf %88, %92 : vector<1x64xf32>
    %94 = vector.extract_strided_slice %86 {offsets = [0, 192], sizes = [1, 64], strides = [1, 1]} : vector<1x256xf32> to vector<1x64xf32>
    %95 = math.tanh %93 : vector<1x64xf32>
    %96 = arith.mulf %94, %95 : vector<1x64xf32>
    %97 = vector.extract_strided_slice %7 {offsets = [5, 0], sizes = [1, 256], strides = [1, 1]} : vector<8x256xf32> to vector<1x256xf32>
    %98 = arith.truncf %96 : vector<1x64xf32> to vector<1x64xbf16>
    %cst_16 = arith.constant dense<0.000000e+00> : vector<1x256xf32>
    %99 = tpu.matmul %98, %0, %cst_16 {dimension_numbers = #tpu.dot_dimension_numbers<[1], [0], [0], [1], [0, 0, 1, 1], [], []>} : vector<1x64xbf16>, vector<64x256xbf16>, vector<1x256xf32> -> vector<1x256xf32>
    %100 = arith.addf %97, %99 : vector<1x256xf32>
    %101 = arith.negf %100 : vector<1x256xf32>
    %102 = math.exp %101 : vector<1x256xf32>
    %cst_17 = arith.constant 1.000000e+00 : f32
    %103 = vector.broadcast %cst_17 : f32 to vector<1x256xf32>
    %104 = arith.addf %103, %102 : vector<1x256xf32>
    %105 = arith.divf %103, %104 : vector<1x256xf32>
    %106 = vector.extract_strided_slice %105 {offsets = [0, 64], sizes = [1, 64], strides = [1, 1]} : vector<1x256xf32> to vector<1x64xf32>
    %107 = arith.mulf %106, %93 : vector<1x64xf32>
    %108 = vector.extract_strided_slice %105 {offsets = [0, 0], sizes = [1, 64], strides = [1, 1]} : vector<1x256xf32> to vector<1x64xf32>
    %109 = vector.extract_strided_slice %100 {offsets = [0, 128], sizes = [1, 64], strides = [1, 1]} : vector<1x256xf32> to vector<1x64xf32>
    %110 = math.tanh %109 : vector<1x64xf32>
    %111 = arith.mulf %108, %110 : vector<1x64xf32>
    %112 = arith.addf %107, %111 : vector<1x64xf32>
    %113 = vector.extract_strided_slice %105 {offsets = [0, 192], sizes = [1, 64], strides = [1, 1]} : vector<1x256xf32> to vector<1x64xf32>
    %114 = math.tanh %112 : vector<1x64xf32>
    %115 = arith.mulf %113, %114 : vector<1x64xf32>
    %116 = vector.extract_strided_slice %7 {offsets = [6, 0], sizes = [1, 256], strides = [1, 1]} : vector<8x256xf32> to vector<1x256xf32>
    %117 = arith.truncf %115 : vector<1x64xf32> to vector<1x64xbf16>
    %cst_18 = arith.constant dense<0.000000e+00> : vector<1x256xf32>
    %118 = tpu.matmul %117, %0, %cst_18 {dimension_numbers = #tpu.dot_dimension_numbers<[1], [0], [0], [1], [0, 0, 1, 1], [], []>} : vector<1x64xbf16>, vector<64x256xbf16>, vector<1x256xf32> -> vector<1x256xf32>
    %119 = arith.addf %116, %118 : vector<1x256xf32>
    %120 = arith.negf %119 : vector<1x256xf32>
    %121 = math.exp %120 : vector<1x256xf32>
    %cst_19 = arith.constant 1.000000e+00 : f32
    %122 = vector.broadcast %cst_19 : f32 to vector<1x256xf32>
    %123 = arith.addf %122, %121 : vector<1x256xf32>
    %124 = arith.divf %122, %123 : vector<1x256xf32>
    %125 = vector.extract_strided_slice %124 {offsets = [0, 64], sizes = [1, 64], strides = [1, 1]} : vector<1x256xf32> to vector<1x64xf32>
    %126 = arith.mulf %125, %112 : vector<1x64xf32>
    %127 = vector.extract_strided_slice %124 {offsets = [0, 0], sizes = [1, 64], strides = [1, 1]} : vector<1x256xf32> to vector<1x64xf32>
    %128 = vector.extract_strided_slice %119 {offsets = [0, 128], sizes = [1, 64], strides = [1, 1]} : vector<1x256xf32> to vector<1x64xf32>
    %129 = math.tanh %128 : vector<1x64xf32>
    %130 = arith.mulf %127, %129 : vector<1x64xf32>
    %131 = arith.addf %126, %130 : vector<1x64xf32>
    %132 = vector.extract_strided_slice %124 {offsets = [0, 192], sizes = [1, 64], strides = [1, 1]} : vector<1x256xf32> to vector<1x64xf32>
    %133 = math.tanh %131 : vector<1x64xf32>
    %134 = arith.mulf %132, %133 : vector<1x64xf32>
    %135 = vector.extract_strided_slice %7 {offsets = [7, 0], sizes = [1, 256], strides = [1, 1]} : vector<8x256xf32> to vector<1x256xf32>
    %136 = arith.truncf %134 : vector<1x64xf32> to vector<1x64xbf16>
    %cst_20 = arith.constant dense<0.000000e+00> : vector<1x256xf32>
    %137 = tpu.matmul %136, %0, %cst_20 {dimension_numbers = #tpu.dot_dimension_numbers<[1], [0], [0], [1], [0, 0, 1, 1], [], []>} : vector<1x64xbf16>, vector<64x256xbf16>, vector<1x256xf32> -> vector<1x256xf32>
    %138 = arith.addf %135, %137 : vector<1x256xf32>
    %139 = arith.negf %138 : vector<1x256xf32>
    %140 = math.exp %139 : vector<1x256xf32>
    %cst_21 = arith.constant 1.000000e+00 : f32
    %141 = vector.broadcast %cst_21 : f32 to vector<1x256xf32>
    %142 = arith.addf %141, %140 : vector<1x256xf32>
    %143 = arith.divf %141, %142 : vector<1x256xf32>
    %144 = vector.extract_strided_slice %143 {offsets = [0, 64], sizes = [1, 64], strides = [1, 1]} : vector<1x256xf32> to vector<1x64xf32>
    %145 = arith.mulf %144, %131 : vector<1x64xf32>
    %146 = vector.extract_strided_slice %143 {offsets = [0, 0], sizes = [1, 64], strides = [1, 1]} : vector<1x256xf32> to vector<1x64xf32>
    %147 = vector.extract_strided_slice %138 {offsets = [0, 128], sizes = [1, 64], strides = [1, 1]} : vector<1x256xf32> to vector<1x64xf32>
    %148 = math.tanh %147 : vector<1x64xf32>
    %149 = arith.mulf %146, %148 : vector<1x64xf32>
    %150 = arith.addf %145, %149 : vector<1x64xf32>
    %151 = vector.extract_strided_slice %143 {offsets = [0, 192], sizes = [1, 64], strides = [1, 1]} : vector<1x256xf32> to vector<1x64xf32>
    %152 = math.tanh %150 : vector<1x64xf32>
    %153 = arith.mulf %151, %152 : vector<1x64xf32>
    %c0_22 = arith.constant 0 : index
    %c0_23 = arith.constant 0 : index
    %154 = vector.load %arg4[%c0_22, %c0_23] : memref<64x128xf32, #tpu.memory_space<vmem>>, vector<64x128xf32>
    %cst_24 = arith.constant dense<0.000000e+00> : vector<1x128xf32>
    %155 = tpu.matmul %153, %154, %cst_24 {dimension_numbers = #tpu.dot_dimension_numbers<[1], [0], [0], [1], [0, 0, 1, 1], [], []>} : vector<1x64xf32>, vector<64x128xf32>, vector<1x128xf32> -> vector<1x128xf32>
    %c0_25 = arith.constant 0 : index
    %c0_26 = arith.constant 0 : index
    %156 = vector.load %arg5[%c0_25, %c0_26] : memref<1x128xf32, #tpu.memory_space<vmem>>, vector<1x128xf32>
    %157 = arith.addf %155, %156 : vector<1x128xf32>
    %c0_27 = arith.constant 0 : index
    %c0_28 = arith.constant 0 : index
    %158 = vector.load %arg6[%c0_27, %c0_28] : memref<1x128xf32, #tpu.memory_space<vmem>>, vector<1x128xf32>
    tpu.vector_store %arg6[%c0_27, %c0_28], %157 {strides = array<i32>} : memref<1x128xf32, #tpu.memory_space<vmem>>, vector<1x128xf32>,
    return
  }
}

</mosaic_0001>

<bundles_post_ra>
// kernel: tpu_custom_call.1
= control target key start
LH: loop header
LB: loop body
LE: loop exit
PB: predicated region body
PF: predicated region fallthrough
CT: control target
= control target key end

     0   :  { %11 = vsyncpa [#allocation3], 0  ;;  %s1413_s0 = inlined_call_operand.hbm [shape: f32[8,32], index: 0, kind: input, shape index: {}]   ;;  %s1414_s1 = inlined_call_operand.hbm [shape: bf16[32,256], index: 1, kind: input, shape index: {}]   ;;  %s1415_s2 = inlined_call_operand.hbm [shape: bf16[64,256], index: 2, kind: input, shape index: {}]   ;;  %s1416_s3 = inlined_call_operand.vmem [shape: f32[1,256], index: 3, kind: input, shape index: {}]   ;;  %s1417_s4 = inlined_call_operand.hbm [shape: f32[64,128], index: 4, kind: input, shape index: {}]   ;;  %s1418_s5 = inlined_call_operand.vmem [shape: f32[1,128], index: 5, kind: input, shape index: {}]   ;;  %s1419_s6 = inlined_call_operand.hbm [shape: f32[1,128], index: 6, kind: output, shape index: {}]  }
   0x1   :  { %12 = vsyncpa [#allocation6], 0 }
   0x2   :  { %13 = vsyncpa [#allocation9], 0 }
   0x3   :  { %14 = vsyncpa [#allocation4], 0  ;;  %s1211_s21 = smov [#allocation5]  }
   0x4   :  { %s30_s22 = sshll.u32 %s1211_s21, 4  ;;  %s31_s22 = int_to_ptr.vmem [resolvable:$true] %s30_s22 }
   0x5   :  { %s1111_s23 = scalar_lea.vmem %s31_s22, 512  ;;  %p1116_p1 = scmp.lt.s32.totalorder %s31_s22, %s31_s22 }
   0x6   :  { %p1112_p0 = scmp.ne.s32.totalorder %s31_s22, %s1111_s23  ;;  %p1117_p2 = scmp.lt.s32.totalorder %s1111_s23, %s1111_s23 }
   0x8   :  { %p1118_p3 = por %p1117_p2, %p1116_p1 }
   0xa   :  { %p1119_p4 = pnand %p1118_p3, %p1112_p0 }
   0xc   :  { %1122 = shalt.err (!%p1119_p4)
}
   0xd   :  { %s1212_s24 = smov 128   ;;  %s1213_s25 = smov 8  }
   0xe   :  { %36 = dma.hbm_to_vmem [thread:$0]  %s1414_s1, 512, %s31_s22, [#allocation6], %s1212_s24, %s1212_s24, %s1213_s25  }
   0xf   :  { %s1214_s28 = smov [#allocation2]   ;;  %s1215_s30 = smov [#allocation7]  }
  0x10   :  { %s21_s29 = sshll.u32 %s1214_s28, 4  ;;  %s42_s7 = sshll.u32 %s1215_s30, 4  ;;  %s22_s29 = int_to_ptr.vmem [resolvable:$true] %s21_s29  ;;  %s43_s7 = int_to_ptr.vmem [resolvable:$true] %s42_s7 }
  0x11   :  { %s1131_s8 = scalar_lea.vmem %s22_s29, 128  ;;  %p1136_p6 = scmp.lt.s32.totalorder %s22_s29, %s22_s29 }
  0x12   :  { %p1132_p5 = scmp.ne.s32.totalorder %s22_s29, %s1131_s8  ;;  %p1137_p7 = scmp.lt.s32.totalorder %s1131_s8, %s1131_s8 }
  0x14   :  { %p1138_p8 = por %p1137_p7, %p1136_p6 }
  0x16   :  { %p1139_p9 = pnand %p1138_p8, %p1132_p5 }
  0x18   :  { %1142 = shalt.err (!%p1139_p9)
}
  0x19   :  { %24 = dma.hbm_to_vmem [thread:$0]  %s1413_s0, 128, %s22_s29, [#allocation3]  }
  0x1a   :  { %s1151_s11 = scalar_lea.vmem %s43_s7, 1024  ;;  %p1156_p11 = scmp.lt.s32.totalorder %s43_s7, %s43_s7 }
  0x1b   :  { %p1152_p10 = scmp.ne.s32.totalorder %s43_s7, %s1151_s11  ;;  %p1157_p12 = scmp.lt.s32.totalorder %s1151_s11, %s1151_s11 }
  0x1d   :  { %p1158_p13 = por %p1157_p12, %p1156_p11 }
  0x1f   :  { %p1159_p0 = pnand %p1158_p13, %p1152_p10 }
  0x21   :  { %1162 = shalt.err (!%p1159_p0)
}
  0x22   :  { %48 = dma.hbm_to_vmem [thread:$0]  %s1415_s2, 1024, %s43_s7, [#allocation6], %s1212_s24, %s1212_s24, %s1213_s25  }
  0x23   :  { %s1216_s13 = smov [#allocation8]  }
  0x24   :  { %s56_s14 = sshll.u32 %s1216_s13, 4  ;;  %s57_s14 = int_to_ptr.vmem [resolvable:$true] %s56_s14 }
  0x25   :  { %s1171_s15 = scalar_lea.vmem %s57_s14, 1024  ;;  %p1176_p2 = scmp.lt.s32.totalorder %s57_s14, %s57_s14 }
  0x26   :  { %p1172_p1 = scmp.ne.s32.totalorder %s57_s14, %s1171_s15  ;;  %p1177_p3 = scmp.lt.s32.totalorder %s1171_s15, %s1171_s15 }
  0x28   :  { %p1178_p4 = por %p1177_p3, %p1176_p2 }
  0x2a   :  { %p1179_p5 = pnand %p1178_p4, %p1172_p1 }
  0x2c   :  { %1182 = shalt.err (!%p1179_p5)
}
  0x2d   :  { %62 = dma.hbm_to_vmem [thread:$0]  %s1417_s4, 1024, %s57_s14, [#allocation9], %s1212_s24, %s1212_s24, %s1213_s25  }
  0x2e   :  { %1203 = dma.done.wait [#allocation3], 128  }
  0x2f   :  { %1204 = vsyncadd [#allocation3], 4294967168 }
  0x30   :  { %1205 = dma.done.wait [#allocation6], 1536  }
  0x31   :  { %1206 = vsyncadd [#allocation6], 4294965760 }
  0x32   :  { %1207 = dma.done.wait [#allocation9], 1024  }
  0x33   :  { %1208 = vsyncadd [#allocation9], 4294966272  ;;  %v1217_v0 = vmov 0   ;;  %v989_v1 = vld [vmem:[#allocation5 + $0x14] ss:$8 sps:$4 sm:$0xff]   ;;  %vm124_vm0 = vcmask 261120   ;;  %v94_v7 = vlaneseq }
  0x34   :  { %160 = vmatprep.mubr.bf16.mxu0 %v1217_v0  ;;  %269 = vmatprep.mubr.bf16.mxu1 %v1217_v0  ;;  %v991_v2 = vld [vmem:[#allocation5 + $0x10] ss:$8 sps:$4 sm:$0xff]   ;;  %v992_v3 = vld [vmem:[#allocation5 + $0x4] ss:$8 sps:$4 sm:$0xff]   ;;  %v994_v4 = vld [vmem:[#allocation5] ss:$8 sps:$4 sm:$0xff]  }
  0x35   :  { %140 = vmatprep.subr.bf16.mxu0 %v989_v1  ;;  %v86_v5 = vld [vmem:[#allocation2] sm:$0xff]  ;;  %v95_v8 = vshrl.u32 %v94_v7, 7  ;;  %v1295_v29 = vld [vmem:[#allocation7 + $0x24] ss:$8 sps:$4 sm:$0xff]   ;;  %v1300_v30 = vld [vmem:[#allocation7 + $0x20] ss:$8 sps:$4 sm:$0xff]  }
  0x36   :  { %141 = vmatpush1.bf16.msra.mxu0 %v991_v2  ;;  %v87_v6 = vpack.c.bf16 %v86_v5, %v86_v5  ;;  %v92_v10 = vld [vmem:[%s1416_s3] sm:$0x3]  ;;  %s1218_s3 = smov 64   ;;  %v1291_v27 = vld [vmem:[#allocation7 + $0x34] ss:$8 sps:$4 sm:$0xff]   ;;  %vm233_vm1 = vcmask 523264  }
  0x37   :  { %142 = vmatprep.subr.bf16.mxu0 %v992_v3  ;;  %v96_v9 = vsub.s32 0, %v95_v8  ;;  %v100_v18 = vsub.s32 1, %v95_v8  ;;  %v1293_v28 = vld [vmem:[#allocation7 + $0x30] ss:$8 sps:$4 sm:$0xff]   ;;  %245 = vmatprep.subr.bf16.mxu1 %v1291_v27  ;;  %v1304_v31 = vld [vmem:[#allocation7 + $0x14] ss:$8 sps:$4 sm:$0xff]  }
  0x38   :  { %246 = vmatpush1.bf16.msra.mxu1 %v1293_v28  ;;  %v1308_v32 = vld [vmem:[#allocation7 + $0x10] ss:$8 sps:$4 sm:$0xff]   ;;  %v1312_v34 = vld [vmem:[#allocation7 + $0x4] ss:$8 sps:$4 sm:$0xff]   ;;  %v1317_v35 = vld [vmem:[#allocation7] ss:$8 sps:$4 sm:$0xff]  }
  0x39   :  { %v97_v11 = vrot.slane %v92_v10, %v96_v9  ;;  %v101_v19 = vrot.slane %v92_v10, %v100_v18  ;;  %247 = vmatprep.subr.bf16.mxu1 %v1295_v29  ;;  %vm1220_vm2 = vmmov 0   ;;  %s1221_s19 = smov [#allocation10]  }
  0x3a   :  { %143 = vmatpush1.bf16.msra.mxu0 %v994_v4  ;;  %s902_s20 = sshll.u32 %s1221_s19, 4  ;;  %s903_s20 = int_to_ptr.vmem [resolvable:$true] %s902_s20 }
  0x3b   :  { %330 = vmatprep.subr.bf16.mxu0 %v1291_v27  ;;  %s1183_s21 = scalar_lea.vmem %s903_s20, 16  ;;  %s1187_s22 = scalar_lea.vmem %s903_s20, 32 }
  0x3c   :  { %248 = vmatpush1.bf16.msra.mxu1 %v1300_v30  ;;  %p1184_p6 = scmp.ne.s32.totalorder %s903_s20, %s1183_s21  ;;  %p1188_p7 = scmp.lt.s32.totalorder %s903_s20, %s903_s20 }
  0x3d   :  { %917 = vmatmul.mubr.msk.bf16.vlgmr.msra.gmra.mxu0 %vm124_vm0, %v87_v6  ;;  %249 = vmatprep.subr.bf16.mxu1 %v1304_v31  ;;  %p1189_p8 = scmp.lt.s32.totalorder %s1187_s22, %s1183_s21 }
  0x3e   :  { %354 = vmatprep.mubr.bf16.mxu0 %v1217_v0  ;;  %331 = vmatpush1.bf16.msra.mxu0 %v1293_v28 }
  0x3f   :  { %332 = vmatprep.subr.bf16.mxu0 %v1295_v29  ;;  %p1190_p9 = por %p1189_p8, %p1188_p7 }
  0x40   :  { %250 = vmatpush1.bf16.msra.mxu1 %v1308_v32 }
  0x41   :  { %251 = vmatprep.subr.bf16.mxu1 %v1312_v34  ;;  %p1191_p10 = pnand %p1190_p9, %p1184_p6 }
  0x42   :  { %333 = vmatpush1.bf16.msra.mxu0 %v1300_v30 }
  0x43   :  { %334 = vmatprep.subr.bf16.mxu0 %v1304_v31 }
  0x44   :  { %252 = vmatpush1.bf16.msra.mxu1 %v1317_v35 }
  0x45   :  { %412 = vmatprep.subr.bf16.mxu1 %v1291_v27 }
  0x46   :  { %335 = vmatpush1.bf16.msra.mxu0 %v1308_v32 }
  0x47   :  { %336 = vmatprep.subr.bf16.mxu0 %v1312_v34 }
  0x4a   :  { %337 = vmatpush1.bf16.msra.mxu0 %v1317_v35 }
  0x4b   :  { %496 = vmatprep.subr.bf16.mxu0 %v1291_v27 }
  0xfd   :  { %v162_v12 = vpop.f32.mrf.mxu0 }
  0xfe   :  { %v1284_v13 = vadd.f32 %v162_v12, %v97_v11 }
  0xff   :  { %v164_v14 = vpop.f32.mrf.mxu0 }
 0x100   :  { %v918_v15 = vmul.f32 -1.442695, %v1284_v13  ;;  %v1287_v20 = vadd.f32 %v164_v14, %v101_v19 }
 0x101   :  { %v166_v16 = vpop.f32.mrf.mxu0 }
 0x102   :  { %1007 = vpow2.f32 %v918_v15  ;;  %v919_v36 = vmul.f32 -1.442695, %v1287_v20 }
 0x103   :  { %v167_v17 = vpop.f32.mrf.mxu0  ;;  %1009 = vtanh.f32 %v1287_v20 }
 0x10f   :  { %v1008_v21 = vpop.eup %1007 }
 0x110   :  { %v175_v22 = vadd.f32 1.0, %v1008_v21  ;;  %v1010_v23 = vpop.eup %1009 }
 0x112   :  { %1011 = vrcp.f32 %v175_v22 }
 0x11f   :  { %v1012_v24 = vpop.eup %1011 }
 0x120   :  { %v182_v25 = vmul.f32 %v1012_v24, %v1010_v23 }
 0x122   :  { %v299_v26 = vrot.slane %v182_v25, 7  ;;  %1013 = vtanh.f32 %v182_v25 }
 0x123   :  { %1015 = vpow2.f32 %v919_v36 }
 0x124   :  { %300 = vrot.lane.b32.xlu1 %v299_v26, %s1218_s3 }
 0x12f   :  { %v1014_v33 = vpop.eup %1013 }
 0x130   :  { %185 = vrot.lane.b32.xlu0 %v1014_v33, %s1218_s3  ;;  %v1016_v37 = vpop.eup %1015 }
 0x131   :  { %v176_v38 = vadd.f32 1.0, %v1016_v37 }
 0x133   :  { %1017 = vrcp.f32 %v176_v38 }
 0x140   :  { %v1018_v39 = vpop.eup %1017 }
 0x196   :  { %v301_v60 = vpop.permute.xlu1 %300 }
 0x1a2   :  { %v186_v40 = vpop.permute.xlu0 %185 }
 0x1a3   :  { %v188_v41 = vmul.f32 %v1018_v39, %v186_v40 }
 0x1a5   :  { %v189_v42 = vpack.c.bf16 %v188_v41, %v188_v41 }
 0x1a7   :  { %191 = vrot.lane.b32.xlu0 %v189_v42, %s1218_s3 }
 0x219   :  { %v192_v43 = vpop.permute.xlu0 %191 }
 0x21a   :  { %928 = vmatmul.mubr.msk.bf16.vlgmr.msra.gmra.mxu1 %vm233_vm1, %v192_v43 }
 0x21b   :  { %413 = vmatpush1.bf16.msra.mxu1 %v1293_v28  ;;  %436 = vmatprep.mubr.bf16.mxu1 %v1217_v0 }
 0x21c   :  { %414 = vmatprep.subr.bf16.mxu1 %v1295_v29 }
 0x21f   :  { %415 = vmatpush1.bf16.msra.mxu1 %v1300_v30 }
 0x220   :  { %416 = vmatprep.subr.bf16.mxu1 %v1304_v31 }
 0x223   :  { %417 = vmatpush1.bf16.msra.mxu1 %v1308_v32 }
 0x224   :  { %418 = vmatprep.subr.bf16.mxu1 %v1312_v34 }
 0x227   :  { %419 = vmatpush1.bf16.msra.mxu1 %v1317_v35 }
 0x228   :  { %578 = vmatprep.subr.bf16.mxu1 %v1291_v27 }
 0x2da   :  { %v271_v44 = vpop.f32.mrf.mxu1 }
 0x2db   :  { %v280_v45 = vrot.slane %v271_v44, 7 }
 0x2dc   :  { %v273_v46 = vpop.f32.mrf.mxu1 }
 0x2dd   :  { %v284_v47 = vadd.f32 %v280_v45, %v1284_v13  ;;  %v281_v51 = vrot.slane %v273_v46, 7 }
 0x2de   :  { %v275_v48 = vpop.f32.mrf.mxu1 }
 0x2df   :  { %v929_v49 = vmul.f32 -1.442695, %v284_v47  ;;  %v285_v52 = vadd.f32 %v281_v51, %v1287_v20 }
 0x2e0   :  { %v276_v50 = vpop.f32.mrf.mxu1 }
 0x2e1   :  { %1019 = vpow2.f32 %v929_v49  ;;  %v930_v58 = vmul.f32 -1.442695, %v285_v52 }
 0x2e2   :  { %1021 = vtanh.f32 %v285_v52 }
 0x2ee   :  { %v1020_v53 = vpop.eup %1019 }
 0x2ef   :  { %v292_v54 = vadd.f32 1.0, %v1020_v53  ;;  %v1022_v55 = vpop.eup %1021 }
 0x2f1   :  { %1023 = vrcp.f32 %v292_v54 }
 0x2f2   :  { %1025 = vpow2.f32 %v930_v58 }
 0x2fe   :  { %v1024_v56 = vpop.eup %1023 }
 0x2ff   :  { %v305_v57 = vmul.f32 %v1024_v56, %v1022_v55  ;;  %v1026_v59 = vpop.eup %1025  ;;  %v303_v62 = vmul.f32 %v1024_v56, %v301_v60 }
 0x300   :  { %v293_v61 = vadd.f32 1.0, %v1026_v59 }
 0x301   :  { %307 = vrot.lane.b32.xlu1 %v305_v57, %s1218_s3 }
 0x302   :  { %1027 = vrcp.f32 %v293_v61 }
 0x30f   :  { %v1028_v2 = vpop.eup %1027 }
 0x373   :  { %v308_v63 = vpop.permute.xlu1 %307 }
 0x374   :  { %v310_v1 = vadd.f32 %v308_v63, %v303_v62 }
 0x376   :  { %1029 = vtanh.f32 %v310_v1  ;;  %v384_v22 = vrot.slane %v310_v1, 7 }
 0x383   :  { %v1030_v3 = vpop.eup %1029 }
 0x384   :  { %v312_v4 = vmul.f32 %v1030_v3, %v1028_v2 }
 0x386   :  { %v313_v5 = vpack.c.bf16 %v312_v4, %v312_v4 }
 0x388   :  { %v315_v6 = vshrl.u32 %v313_v5, 16 }
 0x38a   :  { %317 = vrot.lane.b32.xlu0 %v315_v6, %s1218_s3 }
 0x3fc   :  { %v318_v7 = vpop.permute.xlu0 %317 }
 0x3fd   :  { %931 = vmatmul.mubr.msk.bf16.vlgmr.msra.gmra.mxu0 %vm233_vm1, %v318_v7 }
 0x3fe   :  { %497 = vmatpush1.bf16.msra.mxu0 %v1293_v28  ;;  %520 = vmatprep.mubr.bf16.mxu0 %v1217_v0 }
 0x3ff   :  { %498 = vmatprep.subr.bf16.mxu0 %v1295_v29 }
 0x402   :  { %499 = vmatpush1.bf16.msra.mxu0 %v1300_v30 }
 0x403   :  { %500 = vmatprep.subr.bf16.mxu0 %v1304_v31 }
 0x406   :  { %501 = vmatpush1.bf16.msra.mxu0 %v1308_v32 }
 0x407   :  { %502 = vmatprep.subr.bf16.mxu0 %v1312_v34 }
 0x40a   :  { %503 = vmatpush1.bf16.msra.mxu0 %v1317_v35 }
 0x40b   :  { %662 = vmatprep.subr.bf16.mxu0 %v1291_v27 }
 0x4bd   :  { %v356_v8 = vpop.f32.mrf.mxu0 }
 0x4be   :  { %v365_v9 = vrot.slane %v356_v8, 6 }
 0x4bf   :  { %v358_v10 = vpop.f32.mrf.mxu0 }
 0x4c0   :  { %v369_v11 = vadd.f32 %v365_v9, %v1284_v13  ;;  %v366_v16 = vrot.slane %v358_v10, 6 }
 0x4c1   :  { %v360_v12 = vpop.f32.mrf.mxu0 }
 0x4c2   :  { %v932_v14 = vmul.f32 -1.442695, %v369_v11  ;;  %v370_v17 = vadd.f32 %v366_v16, %v1287_v20 }
 0x4c3   :  { %v361_v15 = vpop.f32.mrf.mxu0 }
 0x4c4   :  { %1031 = vpow2.f32 %v932_v14  ;;  %v933_v26 = vmul.f32 -1.442695, %v370_v17 }
 0x4c5   :  { %1033 = vtanh.f32 %v370_v17 }
 0x4d1   :  { %v1032_v18 = vpop.eup %1031 }
 0x4d2   :  { %v377_v19 = vadd.f32 1.0, %v1032_v18  ;;  %v1034_v21 = vpop.eup %1033 }
 0x4d4   :  { %1035 = vrcp.f32 %v377_v19 }
 0x4d5   :  { %1037 = vpow2.f32 %v933_v26 }
 0x4e1   :  { %v1036_v23 = vpop.eup %1035 }
 0x4e2   :  { %v388_v24 = vmul.f32 %v1036_v23, %v1034_v21  ;;  %v386_v25 = vmul.f32 %v1036_v23, %v384_v22  ;;  %v1038_v33 = vpop.eup %1037 }
 0x4e3   :  { %v378_v36 = vadd.f32 1.0, %v1038_v33 }
 0x4e4   :  { %390 = vrot.lane.b32.xlu1 %v388_v24, %s1218_s3 }
 0x4e5   :  { %1039 = vrcp.f32 %v378_v36 }
 0x4f2   :  { %v1040_v39 = vpop.eup %1039 }
 0x556   :  { %v391_v37 = vpop.permute.xlu1 %390 }
 0x557   :  { %v393_v38 = vadd.f32 %v391_v37, %v386_v25 }
 0x559   :  { %1041 = vtanh.f32 %v393_v38  ;;  %v466_v57 = vrot.slane %v393_v38, 7 }
 0x566   :  { %v1042_v40 = vpop.eup %1041 }
 0x567   :  { %v395_v41 = vmul.f32 %v1042_v40, %v1040_v39 }
 0x569   :  { %v396_v42 = vpack.c.bf16 %v395_v41, %v395_v41 }
 0x56b   :  { %v398_v43 = vrot.slane %v396_v42, 1 }
 0x56d   :  { %399 = vrot.lane.b32.xlu0 %v398_v43, %s1218_s3 }
 0x5df   :  { %v400_v44 = vpop.permute.xlu0 %399 }
 0x5e0   :  { %934 = vmatmul.mubr.msk.bf16.vlgmr.msra.gmra.mxu1 %vm233_vm1, %v400_v44 }
 0x5e1   :  { %579 = vmatpush1.bf16.msra.mxu1 %v1293_v28  ;;  %602 = vmatprep.mubr.bf16.mxu1 %v1217_v0 }
 0x5e2   :  { %580 = vmatprep.subr.bf16.mxu1 %v1295_v29 }
 0x5e5   :  { %581 = vmatpush1.bf16.msra.mxu1 %v1300_v30 }
 0x5e6   :  { %582 = vmatprep.subr.bf16.mxu1 %v1304_v31 }
 0x5e9   :  { %583 = vmatpush1.bf16.msra.mxu1 %v1308_v32 }
 0x5ea   :  { %584 = vmatprep.subr.bf16.mxu1 %v1312_v34 }
 0x5ed   :  { %585 = vmatpush1.bf16.msra.mxu1 %v1317_v35 }
 0x5ee   :  { %744 = vmatprep.subr.bf16.mxu1 %v1291_v27 }
 0x6a0   :  { %v438_v45 = vpop.f32.mrf.mxu1 }
 0x6a1   :  { %v447_v46 = vrot.slane %v438_v45, 5 }
 0x6a2   :  { %v440_v47 = vpop.f32.mrf.mxu1 }
 0x6a3   :  { %v451_v48 = vadd.f32 %v447_v46, %v1284_v13  ;;  %v448_v52 = vrot.slane %v440_v47, 5 }
 0x6a4   :  { %v442_v49 = vpop.f32.mrf.mxu1 }
 0x6a5   :  { %v935_v50 = vmul.f32 -1.442695, %v451_v48  ;;  %v452_v53 = vadd.f32 %v448_v52, %v1287_v20 }
 0x6a6   :  { %v443_v51 = vpop.f32.mrf.mxu1 }
 0x6a7   :  { %1043 = vpow2.f32 %v935_v50  ;;  %v936_v60 = vmul.f32 -1.442695, %v452_v53 }
 0x6a8   :  { %1045 = vtanh.f32 %v452_v53 }
 0x6b4   :  { %v1044_v54 = vpop.eup %1043 }
 0x6b5   :  { %v459_v55 = vadd.f32 1.0, %v1044_v54  ;;  %v1046_v56 = vpop.eup %1045 }
 0x6b7   :  { %1047 = vrcp.f32 %v459_v55 }
 0x6b8   :  { %1049 = vpow2.f32 %v936_v60 }
 0x6c4   :  { %v1048_v58 = vpop.eup %1047 }
 0x6c5   :  { %v470_v27 = vmul.f32 %v1048_v58, %v1046_v56  ;;  %v468_v59 = vmul.f32 %v1048_v58, %v466_v57  ;;  %v1050_v61 = vpop.eup %1049 }
 0x6c6   :  { %v460_v62 = vadd.f32 1.0, %v1050_v61 }
 0x6c7   :  { %472 = vrot.lane.b32.xlu1 %v470_v27, %s1218_s3 }
 0x6c8   :  { %1051 = vrcp.f32 %v460_v62 }
 0x6d5   :  { %v1052_v2 = vpop.eup %1051 }
 0x739   :  { %v473_v63 = vpop.permute.xlu1 %472 }
 0x73a   :  { %v475_v1 = vadd.f32 %v473_v63, %v468_v59 }
 0x73c   :  { %1053 = vtanh.f32 %v475_v1  ;;  %v550_v23 = vrot.slane %v475_v1, 7 }
 0x749   :  { %v1054_v3 = vpop.eup %1053 }
 0x74a   :  { %v477_v4 = vmul.f32 %v1054_v3, %v1052_v2 }
 0x74c   :  { %v478_v5 = vpack.c.bf16 %v477_v4, %v477_v4 }
 0x74e   :  { %v480_v6 = vshrl.u32 %v478_v5, 16 }
 0x750   :  { %v482_v7 = vrot.slane %v480_v6, 1 }
 0x752   :  { %483 = vrot.lane.b32.xlu0 %v482_v7, %s1218_s3 }
 0x7c4   :  { %v484_v8 = vpop.permute.xlu0 %483 }
 0x7c5   :  { %937 = vmatmul.mubr.msk.bf16.vlgmr.msra.gmra.mxu0 %vm233_vm1, %v484_v8 }
 0x7c6   :  { %663 = vmatpush1.bf16.msra.mxu0 %v1293_v28  ;;  %686 = vmatprep.mubr.bf16.mxu0 %v1217_v0 }
 0x7c7   :  { %664 = vmatprep.subr.bf16.mxu0 %v1295_v29 }
 0x7ca   :  { %665 = vmatpush1.bf16.msra.mxu0 %v1300_v30 }
 0x7cb   :  { %666 = vmatprep.subr.bf16.mxu0 %v1304_v31 }
 0x7ce   :  { %667 = vmatpush1.bf16.msra.mxu0 %v1308_v32 }
 0x7cf   :  { %668 = vmatprep.subr.bf16.mxu0 %v1312_v34 }
 0x7d2   :  { %669 = vmatpush1.bf16.msra.mxu0 %v1317_v35 }
 0x885   :  { %v522_v9 = vpop.f32.mrf.mxu0 }
 0x886   :  { %v531_v10 = vrot.slane %v522_v9, 4 }
 0x887   :  { %v524_v11 = vpop.f32.mrf.mxu0 }
 0x888   :  { %v535_v12 = vadd.f32 %v531_v10, %v1284_v13  ;;  %v532_v17 = vrot.slane %v524_v11, 4 }
 0x889   :  { %v526_v14 = vpop.f32.mrf.mxu0 }
 0x88a   :  { %v938_v15 = vmul.f32 -1.442695, %v535_v12  ;;  %v536_v18 = vadd.f32 %v532_v17, %v1287_v20 }
 0x88b   :  { %v527_v16 = vpop.f32.mrf.mxu0 }
 0x88c   :  { %1055 = vpow2.f32 %v938_v15  ;;  %v939_v33 = vmul.f32 -1.442695, %v536_v18 }
 0x88d   :  { %1057 = vtanh.f32 %v536_v18 }
 0x899   :  { %v1056_v19 = vpop.eup %1055 }
 0x89a   :  { %v543_v21 = vadd.f32 1.0, %v1056_v19  ;;  %v1058_v22 = vpop.eup %1057 }
 0x89c   :  { %1059 = vrcp.f32 %v543_v21 }
 0x89d   :  { %1061 = vpow2.f32 %v939_v33 }
 0x8a9   :  { %v1060_v24 = vpop.eup %1059 }
 0x8aa   :  { %v554_v25 = vmul.f32 %v1060_v24, %v1058_v22  ;;  %v552_v26 = vmul.f32 %v1060_v24, %v550_v23  ;;  %v1062_v36 = vpop.eup %1061 }
 0x8ab   :  { %v544_v37 = vadd.f32 1.0, %v1062_v36 }
 0x8ac   :  { %556 = vrot.lane.b32.xlu1 %v554_v25, %s1218_s3 }
 0x8ad   :  { %1063 = vrcp.f32 %v544_v37 }
 0x8ba   :  { %v1064_v40 = vpop.eup %1063 }
 0x91e   :  { %v557_v38 = vpop.permute.xlu1 %556 }
 0x91f   :  { %v559_v39 = vadd.f32 %v557_v38, %v552_v26 }
 0x921   :  { %1065 = vtanh.f32 %v559_v39 }
 0x92e   :  { %v1066_v41 = vpop.eup %1065 }
 0x92f   :  { %v561_v42 = vmul.f32 %v1066_v41, %v1064_v40 }
 0x931   :  { %v562_v43 = vpack.c.bf16 %v561_v42, %v561_v42 }
 0x933   :  { %v564_v44 = vrot.slane %v562_v43, 2 }
 0x935   :  { %565 = vrot.lane.b32.xlu0 %v564_v44, %s1218_s3 }
 0x9a7   :  { %v566_v45 = vpop.permute.xlu0 %565 }
 0x9a8   :  { %940 = vmatmul.mubr.msk.bf16.vlgmr.msra.gmra.mxu1 %vm233_vm1, %v566_v45 }
 0x9a9   :  { %745 = vmatpush1.bf16.msra.mxu1 %v1293_v28  ;;  %768 = vmatprep.mubr.bf16.mxu1 %v1217_v0 }
 0x9aa   :  { %746 = vmatprep.subr.bf16.mxu1 %v1295_v29 }
 0x9ad   :  { %747 = vmatpush1.bf16.msra.mxu1 %v1300_v30 }
 0x9ae   :  { %748 = vmatprep.subr.bf16.mxu1 %v1304_v31 }
 0x9b1   :  { %749 = vmatpush1.bf16.msra.mxu1 %v1308_v32 }
 0x9b2   :  { %750 = vmatprep.subr.bf16.mxu1 %v1312_v34  ;;  %v632_v34 = vrot.slane %v559_v39, 7 }
 0x9b5   :  { %751 = vmatpush1.bf16.msra.mxu1 %v1317_v35 }
 0xa68   :  { %v604_v46 = vpop.f32.mrf.mxu1 }
 0xa69   :  { %v613_v47 = vrot.slane %v604_v46, 3 }
 0xa6a   :  { %v606_v48 = vpop.f32.mrf.mxu1 }
 0xa6b   :  { %v617_v49 = vadd.f32 %v613_v47, %v1284_v13  ;;  %v614_v29 = vrot.slane %v606_v48, 3 }
 0xa6c   :  { %v608_v28 = vpop.f32.mrf.mxu1 }
 0xa6d   :  { %v941_v50 = vmul.f32 -1.442695, %v617_v49  ;;  %v618_v30 = vadd.f32 %v614_v29, %v1287_v20 }
 0xa6e   :  { %v609_v0 = vpop.f32.mrf.mxu1 }
 0xa6f   :  { %1067 = vpow2.f32 %v941_v50  ;;  %v942_v54 = vmul.f32 -1.442695, %v618_v30 }
 0xa70   :  { %1069 = vtanh.f32 %v618_v30 }
 0xa7c   :  { %v1068_v51 = vpop.eup %1067 }
 0xa7d   :  { %v625_v31 = vadd.f32 1.0, %v1068_v51  ;;  %v1070_v32 = vpop.eup %1069  ;;  %v817_v51 = vld [vmem:[#allocation8 + $0x38] sm:$0xff] }
 0xa7f   :  { %1071 = vrcp.f32 %v625_v31  ;;  %v816_v31 = vld [vmem:[#allocation8 + $0x30] sm:$0xff] }
 0xa80   :  { %1073 = vpow2.f32 %v942_v54 }
 0xa8c   :  { %v1072_v52 = vpop.eup %1071 }
 0xa8d   :  { %v636_v35 = vmul.f32 %v1072_v52, %v1070_v32  ;;  %v634_v53 = vmul.f32 %v1072_v52, %v632_v34  ;;  %v1074_v55 = vpop.eup %1073  ;;  %v814_v32 = vld [vmem:[#allocation8 + $0x20] sm:$0xff]  ;;  %v813_v34 = vld [vmem:[#allocation8 + $0x18] sm:$0xff]  ;;  %v812_v52 = vld [vmem:[#allocation8 + $0x10] sm:$0xff] }
 0xa8e   :  { %v626_v56 = vadd.f32 1.0, %v1074_v55 }
 0xa8f   :  { %638 = vrot.lane.b32.xlu1 %v636_v35, %s1218_s3  ;;  %v811_v35 = vld [vmem:[#allocation8 + $0x8] sm:$0xff] }
 0xa90   :  { %1075 = vrcp.f32 %v626_v56 }
 0xa9d   :  { %v1076_v27 = vpop.eup %1075 }
 0xb01   :  { %v639_v57 = vpop.permute.xlu1 %638 }
 0xb02   :  { %v641_v58 = vadd.f32 %v639_v57, %v634_v53  ;;  %v810_v53 = vld [vmem:[#allocation8] sm:$0xff] }
 0xb04   :  { %1077 = vtanh.f32 %v641_v58  ;;  %v716_v15 = vrot.slane %v641_v58, 7 }
 0xb11   :  { %v1078_v59 = vpop.eup %1077 }
 0xb12   :  { %v643_v60 = vmul.f32 %v1078_v59, %v1076_v27 }
 0xb14   :  { %v644_v61 = vpack.c.bf16 %v643_v60, %v643_v60 }
 0xb16   :  { %v646_v62 = vshrl.u32 %v644_v61, 16 }
 0xb18   :  { %v648_v63 = vrot.slane %v646_v62, 2 }
 0xb1a   :  { %649 = vrot.lane.b32.xlu0 %v648_v63, %s1218_s3  ;;  %v818_v63 = vld [vmem:[%s1418_s5] sm:$0x1] }
 0xb8c   :  { %v650_v1 = vpop.permute.xlu0 %649 }
 0xb8d   :  { %943 = vmatmul.mubr.msk.bf16.vlgmr.msra.gmra.mxu0 %vm233_vm1, %v650_v1 }
 0xc4d   :  { %v688_v2 = vpop.f32.mrf.mxu0 }
 0xc4e   :  { %v697_v3 = vrot.slane %v688_v2, 2 }
 0xc4f   :  { %v690_v4 = vpop.f32.mrf.mxu0 }
 0xc50   :  { %v701_v5 = vadd.f32 %v697_v3, %v1284_v13  ;;  %v698_v9 = vrot.slane %v690_v4, 2 }
 0xc51   :  { %v692_v6 = vpop.f32.mrf.mxu0 }
 0xc52   :  { %v944_v7 = vmul.f32 -1.442695, %v701_v5  ;;  %v702_v10 = vadd.f32 %v698_v9, %v1287_v20 }
 0xc53   :  { %v693_v8 = vpop.f32.mrf.mxu0 }
 0xc54   :  { %1079 = vpow2.f32 %v944_v7  ;;  %v945_v19 = vmul.f32 -1.442695, %v702_v10 }
 0xc55   :  { %1081 = vtanh.f32 %v702_v10 }
 0xc61   :  { %v1080_v11 = vpop.eup %1079 }
 0xc62   :  { %v709_v12 = vadd.f32 1.0, %v1080_v11  ;;  %v1082_v14 = vpop.eup %1081 }
 0xc64   :  { %1083 = vrcp.f32 %v709_v12 }
 0xc65   :  { %1085 = vpow2.f32 %v945_v19 }
 0xc71   :  { %v1084_v16 = vpop.eup %1083 }
 0xc72   :  { %v720_v17 = vmul.f32 %v1084_v16, %v1082_v14  ;;  %v718_v18 = vmul.f32 %v1084_v16, %v716_v15  ;;  %v1086_v21 = vpop.eup %1085 }
 0xc73   :  { %v710_v22 = vadd.f32 1.0, %v1086_v21 }
 0xc74   :  { %722 = vrot.lane.b32.xlu1 %v720_v17, %s1218_s3 }
 0xc75   :  { %1087 = vrcp.f32 %v710_v22 }
 0xc82   :  { %v1088_v25 = vpop.eup %1087 }
 0xce6   :  { %v723_v23 = vpop.permute.xlu1 %722 }
 0xce7   :  { %v725_v24 = vadd.f32 %v723_v23, %v718_v18 }
 0xce9   :  { %1089 = vtanh.f32 %v725_v24  ;;  %v798_v50 = vrot.slane %v725_v24, 7 }
 0xcf6   :  { %v1090_v26 = vpop.eup %1089 }
 0xcf7   :  { %v727_v33 = vmul.f32 %v1090_v26, %v1088_v25 }
 0xcf9   :  { %v728_v36 = vpack.c.bf16 %v727_v33, %v727_v33 }
 0xcfb   :  { %v730_v37 = vrot.slane %v728_v36, 3 }
 0xcfd   :  { %731 = vrot.lane.b32.xlu0 %v730_v37, %s1218_s3 }
 0xd6f   :  { %v732_v38 = vpop.permute.xlu0 %731 }
 0xd70   :  { %946 = vmatmul.mubr.msk.bf16.vlgmr.msra.gmra.mxu1 %vm233_vm1, %v732_v38 }
 0xe30   :  { %v770_v39 = vpop.f32.mrf.mxu1 }
 0xe31   :  { %v779_v40 = vrot.slane %v770_v39, 1 }
 0xe32   :  { %v772_v41 = vpop.f32.mrf.mxu1 }
 0xe33   :  { %v783_v42 = vadd.f32 %v779_v40, %v1284_v13  ;;  %v780_v46 = vrot.slane %v772_v41, 1  ;;  %v1219_v13 = vmov 0.0  }
 0xe34   :  { %v774_v43 = vpop.f32.mrf.mxu1  ;;  %959 = vmatprep.subr.mxu0 %v1219_v13  ;;  %975 = vmatprep.mubr.msk.f32.mxu0 %vm1220_vm2, %v1219_v13 }
 0xe35   :  { %v947_v44 = vmul.f32 -1.442695, %v783_v42  ;;  %v784_v47 = vadd.f32 %v780_v46, %v1287_v20  ;;  %960 = vmatpush3.msra.mxu0 %v817_v51  ;;  %v815_v20 = vld [vmem:[#allocation8 + $0x28] sm:$0xff] }
 0xe36   :  { %v775_v45 = vpop.f32.mrf.mxu1  ;;  %961 = vmatprep.subr.mxu0 %v1219_v13 }
 0xe37   :  { %1091 = vpow2.f32 %v947_v44  ;;  %962 = vmatpush3.msra.mxu0 %v816_v31  ;;  %v948_v54 = vmul.f32 -1.442695, %v784_v47 }
 0xe38   :  { %1093 = vtanh.f32 %v784_v47  ;;  %963 = vmatprep.subr.mxu0 %v1219_v13 }
 0xe39   :  { %964 = vmatpush3.msra.mxu0 %v815_v20 }
 0xe3a   :  { %965 = vmatprep.subr.mxu0 %v1219_v13 }
 0xe3b   :  { %966 = vmatpush3.msra.mxu0 %v814_v32 }
 0xe3c   :  { %967 = vmatprep.subr.mxu0 %v1219_v13 }
 0xe3d   :  { %968 = vmatpush3.msra.mxu0 %v813_v34 }
 0xe3e   :  { %969 = vmatprep.subr.mxu0 %v1219_v13 }
 0xe3f   :  { %970 = vmatpush3.msra.mxu0 %v812_v52 }
 0xe40   :  { %971 = vmatprep.subr.mxu0 %v1219_v13 }
 0xe41   :  { %972 = vmatpush3.msra.mxu0 %v811_v35 }
 0xe42   :  { %973 = vmatprep.subr.mxu0 %v1219_v13 }
 0xe43   :  { %974 = vmatpush3.msra.mxu0 %v810_v53 }
 0xe44   :  { %v1092_v48 = vpop.eup %1091 }
 0xe45   :  { %v791_v49 = vadd.f32 1.0, %v1092_v48  ;;  %v1094_v28 = vpop.eup %1093 }
 0xe47   :  { %1095 = vrcp.f32 %v791_v49 }
 0xe48   :  { %1097 = vpow2.f32 %v948_v54 }
 0xe54   :  { %v1096_v0 = vpop.eup %1095 }
 0xe55   :  { %v802_v29 = vmul.f32 %v1096_v0, %v1094_v28  ;;  %v800_v30 = vmul.f32 %v1096_v0, %v798_v50  ;;  %v1098_v55 = vpop.eup %1097 }
 0xe56   :  { %v792_v56 = vadd.f32 1.0, %v1098_v55 }
 0xe57   :  { %804 = vrot.lane.b32.xlu1 %v802_v29, %s1218_s3 }
 0xe58   :  { %1099 = vrcp.f32 %v792_v56 }
 0xe65   :  { %v1100_v27 = vpop.eup %1099 }
 0xec9   :  { %v805_v57 = vpop.permute.xlu1 %804 }
 0xeca   :  { %v807_v58 = vadd.f32 %v805_v57, %v800_v30 }
 0xecc   :  { %1101 = vtanh.f32 %v807_v58 }
 0xed9   :  { %v1102_v59 = vpop.eup %1101 }
 0xeda   :  { %v809_v60 = vmul.f32 %v1102_v59, %v1100_v27 }
 0xedc   :  { %v820_v61 = vrot.slane %v809_v60, 7 }
 0xede   :  { %821 = vrot.lane.b32.xlu0 %v820_v61, %s1218_s3 }
 0xf50   :  { %v822_v62 = vpop.permute.xlu0 %821 }
 0xf51   :  { %976 = vmatmul.mubr.msk.f32.vlgmr.msra.gmra.mxu0 %vm233_vm1, %v822_v62 }
0x1011   :  { %v891_v1 = vpop.f32.mrf.mxu0 }
0x1012   :  { %v892_v2 = vadd.f32 %v891_v1, %v818_v63 }
0x1013   :  { %v977_v3 = vpop.f32.mrf.mxu0 }
0x1014   :  { %895 = vst [vmem:[#allocation10] sm:$0x1] %v892_v2 }
0x1015   :  { %1194 = shalt.err (!%p1191_p10)
}
0x1016   :  { %905 = dma.vmem_to_hbm [thread:$0]  %s903_s20, 16, %s1419_s6, [#allocation4]  }
0x1017   :  { %1209 = dma.done.wait [#allocation4], 16  }
0x1018   :  { %1210 = vsyncadd [#allocation4], 4294967280 }
0x1019   :  { %909 = vsyncpa [#allocation3], 1 }
0x101a   :  { %910 = vsyncpa [#allocation6], 1 }
0x101b   :  { %911 = vsyncpa [#allocation9], 1 }
0x101c   :  { %912 = vsyncpa [#allocation4], 1 }

</bundles_post_ra>
